<compile_context>
chip_gen: v6e
topology: v6e:2x2x1
jax: 0.10.0
libtpu: 0.0.40
codegen_flags: <defaults>
</compile_context>

<pallas_src>
import functools

import jax
import jax.numpy as jnp
from jax.experimental import pallas as pl
from jax.experimental.pallas import tpu as pltpu

LANE = 128
SUBLANE = 8


def _round_up(n, m):
    return ((n + m - 1) // m) * m


def _pad2(a, rows, cols):
    return jnp.pad(a, ((0, rows - a.shape[0]), (0, cols - a.shape[1])))


def _pad1(a, n):
    return jnp.pad(a, (0, n - a.shape[0]))


def batch_tiles(batch, tb=128):
    """Return (padded_batch, batch_tile) so padded_batch % batch_tile == 0 and tile % 8 == 0."""
    tb = min(_round_up(batch, SUBLANE), _round_up(tb, SUBLANE))
    return _round_up(batch, tb), tb


def cvae_kernel(x_ref, yc_ref, eps_ref,
                w1_ref, wmv_ref, w3_ref, w4_ref, b_ref,
                recon_ref, muvar_ref, *, D_P, V_P):
    bf16 = jnp.bfloat16
    f32 = jnp.float32

    # Remaining bias slab: [bmu|bvar | b4]; (1, W) rows broadcast along sublanes (cheap VPU add).
    bmv = b_ref[:, :2 * V_P]
    b4 = b_ref[:, 2 * V_P:]

    x_bf = x_ref[...].astype(bf16)
    yc_bf = yc_ref[...].astype(bf16)

    # encode: h1 = relu(x @ W1x + yc @ W1y)   (b1 lives in the constant-one lane row of W1y)
    h1 = jnp.maximum(
        jnp.dot(x_bf, w1_ref[:D_P, :], preferred_element_type=f32)
        + jnp.dot(yc_bf, w1_ref[D_P:, :], preferred_element_type=f32),
        0.0)

    # fused mu / logvar projection: one matmul, split at a 128-lane boundary
    mv = jnp.dot(h1.astype(bf16), wmv_ref[...], preferred_element_type=f32) + bmv
    mu = mv[:, :V_P]
    logvar = mv[:, V_P:]

    # reparameterize (training=True): z = eps * exp(0.5 * logvar) + mu   (f32 elementwise chain)
    z = eps_ref[...] * jnp.exp(0.5 * logvar) + mu

    # decode: relu(z @ W3z + yc @ W3y)   (b3 lives in the constant-one lane row of W3y)
    h3 = jnp.maximum(
        jnp.dot(z.astype(bf16), w3_ref[:V_P, :], preferred_element_type=f32)
        + jnp.dot(yc_bf, w3_ref[V_P:, :], preferred_element_type=f32),
        0.0)

    logits = jnp.dot(h3.astype(bf16), w4_ref[...], preferred_element_type=f32) + b4
    recon_ref[...] = jax.nn.sigmoid(logits)   # EUP logistic, overflow-safe
    muvar_ref[...] = mv


def pack_params(p, input_dim, class_num, hidden_dim, variable_dim):
    """Fuse + zero-pad torch-shaped f32 params into lane-aligned bf16 weight slabs (+ f32 bias)."""
    D, C, H, V = input_dim, class_num, hidden_dim, variable_dim
    O = D + C
    D_P = _round_up(D, LANE)
    C_P = _round_up(C + 1, LANE)      # +1 reserves the constant-one bias lane at column C
    H_P = _round_up(H, LANE)
    V_P = _round_up(V, LANE)
    O_P = _round_up(O, LANE)
    bf16 = jnp.bfloat16

    # encoder slab: [x block ; onehot block], b1 folded into the bias-lane row of the onehot block
    w1y = jnp.zeros((C_P, H_P), jnp.float32)
    w1y = w1y.at[:C, :H].set(p["w1"][D:, :]).at[C, :H].set(p["b1"])
    w1 = jnp.concatenate([_pad2(p["w1"][:D, :], D_P, H_P), w1y], axis=0).astype(bf16)

    # fused mu/logvar projection
    wmv = jnp.concatenate(
        [_pad2(p["wmu"], H_P, V_P), _pad2(p["wvar"], H_P, V_P)], axis=1).astype(bf16)

    # decoder slab: [z block ; onehot block], b3 folded into the bias-lane row of the onehot block
    w3y = jnp.zeros((C_P, H_P), jnp.float32)
    w3y = w3y.at[:C, :H].set(p["w3"][V:, :]).at[C, :H].set(p["b3"])
    w3 = jnp.concatenate([_pad2(p["w3"][:V, :], V_P, H_P), w3y], axis=0).astype(bf16)

    w4 = _pad2(p["w4"], H_P, O_P).astype(bf16)

    # remaining biases (not reachable via the onehot ones-lane): [bmu | bvar | b4], kept f32
    bias = jnp.concatenate(
        [_pad1(p["bmu"], V_P), _pad1(p["bvar"], V_P), _pad1(p["b4"], O_P)])[None, :]

    return {"w1": w1, "wmv": wmv, "w3": w3, "w4": w4, "bias": bias}


@functools.partial(jax.jit, static_argnames=("class_num", "variable_dim", "tb"))
def cvae_forward(x, y, eps_p, packed, *, class_num, variable_dim, tb=128):
    """x: (B, D) f32, y: (B,) int labels, eps_p: (B_P, V_P) f32 (use batch_tiles to size B_P)."""
    B, D = x.shape
    C, V = class_num, variable_dim
    O = D + C

    DC_P, H_P = packed["w1"].shape
    V_P = packed["wmv"].shape[1] // 2
    C_P = packed["w3"].shape[0] - V_P
    D_P = DC_P - C_P
    O_P = packed["w4"].shape[1]

    B_P, TB = batch_tiles(B, tb)
    assert eps_p.shape == (B_P, V_P), "size eps with batch_tiles(B, tb) and V_P"

    # Activation glue (fused XLA ops): pad x rows/lanes, emit one-hot directly at C_P lanes with a
    # constant-one bias lane at column C (carries b1/b3 through the matmuls).
    x_p = jnp.pad(x, ((0, B_P - B), (0, D_P - D)))
    y_p = jnp.pad(y, (0, B_P - B))
    yc_p = jax.nn.one_hot(y_p, C_P, dtype=jnp.float32).at[:, C].set(1.0)

    grid = (B_P // TB,)
    act = lambda w: pl.BlockSpec((TB, w), lambda i: (i, 0))
    full = lambda a: pl.BlockSpec(a.shape, lambda i: (0, 0))   # weights: resident across the grid

    recon_p, muvar_p = pl.pallas_call(
        functools.partial(cvae_kernel, D_P=D_P, V_P=V_P),
        out_shape=(jax.ShapeDtypeStruct((B_P, O_P), jnp.float32),        # padded recon
                   jax.ShapeDtypeStruct((B_P, 2 * V_P), jnp.float32)),   # [mu | logvar] padded
        grid=grid,
        in_specs=[act(D_P), act(C_P), act(V_P),
                  full(packed["w1"]), full(packed["wmv"]),
                  full(packed["w3"]), full(packed["w4"]), full(packed["bias"])],
        out_specs=(pl.BlockSpec((TB, O_P), lambda i: (i, 0)),
                   pl.BlockSpec((TB, 2 * V_P), lambda i: (i, 0))),
        compiler_params=pltpu.CompilerParams(dimension_semantics=("parallel",)),
    )(x_p, yc_p, eps_p,
      packed["w1"], packed["wmv"], packed["w3"], packed["w4"], packed["bias"])

    recon = recon_p[:B, :O]          # padded lanes hold sigmoid(0)=0.5 garbage; sliced away here
    mu = muvar_p[:B, :V]
    logvar = muvar_p[:B, V_P:V_P + V]
    return recon, mu, logvar


def init_params(key, input_dim, hidden_dim, variable_dim, class_num):
    """Deterministic synthetic params, shapes matching the nn.Linear layers ([in, out] layout)."""
    D, H, V, C = input_dim, hidden_dim, variable_dim, class_num
    ks = jax.random.split(key, 10)
    s = 0.05
    return {
        "w1": s * jax.random.normal(ks[0], (D + C, H), jnp.float32),   # embedding
        "b1": s * jax.random.normal(ks[1], (H,), jnp.float32),
        "wmu": s * jax.random.normal(ks[2], (H, V), jnp.float32),      # embedding_mu
        "bmu": s * jax.random.normal(ks[3], (V,), jnp.float32),
        "wvar": s * jax.random.normal(ks[4], (H, V), jnp.float32),     # embedding_var
        "bvar": s * jax.random.normal(ks[5], (V,), jnp.float32),
        "w3": s * jax.random.normal(ks[6], (V + C, H), jnp.float32),   # fc3
        "b3": s * jax.random.normal(ks[7], (H,), jnp.float32),
        "w4": s * jax.random.normal(ks[8], (H, D + C), jnp.float32),   # fc4
        "b4": s * jax.random.normal(ks[9], (D + C,), jnp.float32),
    }


if __name__ == "__main__":
    # Small shapes consistent with the module: x (B, input_dim), y (B,) integer labels.
    # B=64 with tb=32 exercises the batch grid axis (2 steps) while staying small.
    B = 64
    TB_REQ = 32
    input_dim = 32
    hidden_dim = 64
    variable_dim = 16
    class_num = 12

    key = jax.random.PRNGKey(0)
    kx, ky, keps, kp = jax.random.split(key, 4)

    x = jax.random.normal(kx, (B, input_dim), jnp.float32)
    y = jax.random.randint(ky, (B,), 0, class_num)          # LabelBinarizer equivalent is one_hot

    params = init_params(kp, input_dim, hidden_dim, variable_dim, class_num)
    packed = pack_params(params, input_dim, class_num, hidden_dim, variable_dim)

    # eps = randn_like(std) from reparameterize (training=True), drawn deterministically here and
    # sampled directly at the padded (B_P, V_P) shape (padded lanes hit zero rows of W3 -> no-op).
    B_P, TB = batch_tiles(B, TB_REQ)
    V_P = packed["wmv"].shape[1] // 2
    eps_p = jax.random.normal(keps, (B_P, V_P), jnp.float32)

    recon, mu, logvar = cvae_forward(x, y, eps_p, packed,
                                     class_num=class_num, variable_dim=variable_dim, tb=TB_REQ)
    jax.block_until_ready((recon, mu, logvar))

    # Pure-JAX f32 reference using the unfused torch-shaped params.
    y_onehot = jax.nn.one_hot(y, class_num, dtype=jnp.float32)
    eps = eps_p[:B, :variable_dim]
    h1 = jax.nn.relu(jnp.concatenate([x, y_onehot], 1) @ params["w1"] + params["b1"])
    mu_r = h1 @ params["wmu"] + params["bmu"]
    lv_r = h1 @ params["wvar"] + params["bvar"]
    z_r = eps * jnp.exp(0.5 * lv_r) + mu_r
    h3 = jax.nn.relu(jnp.concatenate([z_r, y_onehot], 1) @ params["w3"] + params["b3"])
    recon_r = jax.nn.sigmoid(h3 @ params["w4"] + params["b4"])

    # bf16 MXU operands vs f32 reference -> loosened tolerance (perf-review note).
    assert jnp.allclose(recon, recon_r, atol=2e-2, rtol=2e-2)
    assert jnp.allclose(mu, mu_r, atol=2e-2, rtol=2e-2)
    assert jnp.allclose(logvar, lv_r, atol=2e-2, rtol=2e-2)

    # TODO(synk): inference path (training=False -> z = mu) and generate() are trivial wrapper
    # variants (skip the eps term / repeat mu,logvar); not exercised here.

    print("KERNEL_OK")
</pallas_src>

<mosaic_0001>
module attributes {stable_mosaic.version = 11 : i64} {
  func.func @cvae_kernel(%arg0: i32, %arg1: memref<32x128xf32, #tpu.memory_space<vmem>>, %arg2: memref<32x128xf32, #tpu.memory_space<vmem>>, %arg3: memref<32x128xf32, #tpu.memory_space<vmem>>, %arg4: memref<256x128xbf16, #tpu.memory_space<vmem>>, %arg5: memref<128x256xbf16, #tpu.memory_space<vmem>>, %arg6: memref<256x128xbf16, #tpu.memory_space<vmem>>, %arg7: memref<128x128xbf16, #tpu.memory_space<vmem>>, %arg8: memref<1x384xf32, #tpu.memory_space<vmem>>, %arg9: memref<32x128xf32, #tpu.memory_space<vmem>>, %arg10: memref<32x256xf32, #tpu.memory_space<vmem>>) attributes {dimension_semantics = [#tpu.dimension_semantics<parallel>], iteration_bounds = array<i64: 2>, scalar_prefetch = 0 : i64, scratch_operands = 0 : i64, tpu.core_type = #tpu.core_type<tc>, window_params = [{transform_indices = @transform_0, window_bounds = array<i64: 32, 128>}, {transform_indices = @transform_1, window_bounds = array<i64: 32, 128>}, {transform_indices = @transform_2, window_bounds = array<i64: 32, 128>}, {pipeline_mode = #tpu.pipeline_mode<synchronous>, transform_indices = @transform_3, window_bounds = array<i64: 256, 128>}, {pipeline_mode = #tpu.pipeline_mode<synchronous>, transform_indices = @transform_4, window_bounds = array<i64: 128, 256>}, {pipeline_mode = #tpu.pipeline_mode<synchronous>, transform_indices = @transform_5, window_bounds = array<i64: 256, 128>}, {pipeline_mode = #tpu.pipeline_mode<synchronous>, transform_indices = @transform_6, window_bounds = array<i64: 128, 128>}, {pipeline_mode = #tpu.pipeline_mode<synchronous>, transform_indices = @transform_7, window_bounds = array<i64: 1, 384>}, {transform_indices = @transform_8, window_bounds = array<i64: 32, 128>}, {transform_indices = @transform_9, window_bounds = array<i64: 32, 256>}]} {
    %c0 = arith.constant 0 : index
    %c0_0 = arith.constant 0 : index
    %0 = vector.load %arg8[%c0, %c0_0] : memref<1x384xf32, #tpu.memory_space<vmem>>, vector<1x256xf32>
    %c0_1 = arith.constant 0 : index
    %c256 = arith.constant 256 : index
    %1 = vector.load %arg8[%c0_1, %c256] : memref<1x384xf32, #tpu.memory_space<vmem>>, vector<1x128xf32>
    %c0_2 = arith.constant 0 : index
    %c0_3 = arith.constant 0 : index
    %2 = vector.load %arg1[%c0_2, %c0_3] : memref<32x128xf32, #tpu.memory_space<vmem>>, vector<32x128xf32>
    %3 = arith.truncf %2 : vector<32x128xf32> to vector<32x128xbf16>
    %c0_4 = arith.constant 0 : index
    %c0_5 = arith.constant 0 : index
    %4 = vector.load %arg2[%c0_4, %c0_5] : memref<32x128xf32, #tpu.memory_space<vmem>>, vector<32x128xf32>
    %5 = arith.truncf %4 : vector<32x128xf32> to vector<32x128xbf16>
    %c0_6 = arith.constant 0 : index
    %c0_7 = arith.constant 0 : index
    %6 = vector.load %arg4[%c0_6, %c0_7] : memref<256x128xbf16, #tpu.memory_space<vmem>>, vector<128x128xbf16>
    %cst = arith.constant dense<0.000000e+00> : vector<32x128xf32>
    %7 = tpu.matmul %3, %6, %cst {dimension_numbers = #tpu.dot_dimension_numbers<[1], [0], [0], [1], [0, 0, 1, 1], [], []>} : vector<32x128xbf16>, vector<128x128xbf16>, vector<32x128xf32> -> vector<32x128xf32>
    %c128 = arith.constant 128 : index
    %c0_8 = arith.constant 0 : index
    %8 = vector.load %arg4[%c128, %c0_8] : memref<256x128xbf16, #tpu.memory_space<vmem>>, vector<128x128xbf16>
    %cst_9 = arith.constant dense<0.000000e+00> : vector<32x128xf32>
    %9 = tpu.matmul %5, %8, %cst_9 {dimension_numbers = #tpu.dot_dimension_numbers<[1], [0], [0], [1], [0, 0, 1, 1], [], []>} : vector<32x128xbf16>, vector<128x128xbf16>, vector<32x128xf32> -> vector<32x128xf32>
    %10 = arith.addf %7, %9 : vector<32x128xf32>
    %cst_10 = arith.constant 0.000000e+00 : f32
    %11 = vector.broadcast %cst_10 : f32 to vector<32x128xf32>
    %12 = arith.maximumf %10, %11 : vector<32x128xf32>
    %13 = arith.truncf %12 : vector<32x128xf32> to vector<32x128xbf16>
    %c0_11 = arith.constant 0 : index
    %c0_12 = arith.constant 0 : index
    %14 = vector.load %arg5[%c0_11, %c0_12] : memref<128x256xbf16, #tpu.memory_space<vmem>>, vector<128x256xbf16>
    %cst_13 = arith.constant dense<0.000000e+00> : vector<32x256xf32>
    %15 = tpu.matmul %13, %14, %cst_13 {dimension_numbers = #tpu.dot_dimension_numbers<[1], [0], [0], [1], [0, 0, 1, 1], [], []>} : vector<32x128xbf16>, vector<128x256xbf16>, vector<32x256xf32> -> vector<32x256xf32>
    %16 = vector.broadcast %0 : vector<1x256xf32> to vector<32x256xf32>
    %17 = arith.addf %15, %16 : vector<32x256xf32>
    %18 = vector.extract_strided_slice %17 {offsets = [0, 0], sizes = [32, 128], strides = [1, 1]} : vector<32x256xf32> to vector<32x128xf32>
    %19 = vector.extract_strided_slice %17 {offsets = [0, 128], sizes = [32, 128], strides = [1, 1]} : vector<32x256xf32> to vector<32x128xf32>
    %c0_14 = arith.constant 0 : index
    %c0_15 = arith.constant 0 : index
    %20 = vector.load %arg3[%c0_14, %c0_15] : memref<32x128xf32, #tpu.memory_space<vmem>>, vector<32x128xf32>
    %cst_16 = arith.constant 5.000000e-01 : f32
    %21 = vector.broadcast %cst_16 : f32 to vector<32x128xf32>
    %22 = arith.mulf %21, %19 : vector<32x128xf32>
    %23 = math.exp %22 : vector<32x128xf32>
    %24 = arith.mulf %20, %23 : vector<32x128xf32>
    %25 = arith.addf %24, %18 : vector<32x128xf32>
    %26 = arith.truncf %25 : vector<32x128xf32> to vector<32x128xbf16>
    %c0_17 = arith.constant 0 : index
    %c0_18 = arith.constant 0 : index
    %27 = vector.load %arg6[%c0_17, %c0_18] : memref<256x128xbf16, #tpu.memory_space<vmem>>, vector<128x128xbf16>
    %cst_19 = arith.constant dense<0.000000e+00> : vector<32x128xf32>
    %28 = tpu.matmul %26, %27, %cst_19 {dimension_numbers = #tpu.dot_dimension_numbers<[1], [0], [0], [1], [0, 0, 1, 1], [], []>} : vector<32x128xbf16>, vector<128x128xbf16>, vector<32x128xf32> -> vector<32x128xf32>
    %c128_20 = arith.constant 128 : index
    %c0_21 = arith.constant 0 : index
    %29 = vector.load %arg6[%c128_20, %c0_21] : memref<256x128xbf16, #tpu.memory_space<vmem>>, vector<128x128xbf16>
    %cst_22 = arith.constant dense<0.000000e+00> : vector<32x128xf32>
    %30 = tpu.matmul %5, %29, %cst_22 {dimension_numbers = #tpu.dot_dimension_numbers<[1], [0], [0], [1], [0, 0, 1, 1], [], []>} : vector<32x128xbf16>, vector<128x128xbf16>, vector<32x128xf32> -> vector<32x128xf32>
    %31 = arith.addf %28, %30 : vector<32x128xf32>
    %cst_23 = arith.constant 0.000000e+00 : f32
    %32 = vector.broadcast %cst_23 : f32 to vector<32x128xf32>
    %33 = arith.maximumf %31, %32 : vector<32x128xf32>
    %34 = arith.truncf %33 : vector<32x128xf32> to vector<32x128xbf16>
    %c0_24 = arith.constant 0 : index
    %c0_25 = arith.constant 0 : index
    %35 = vector.load %arg7[%c0_24, %c0_25] : memref<128x128xbf16, #tpu.memory_space<vmem>>, vector<128x128xbf16>
    %cst_26 = arith.constant dense<0.000000e+00> : vector<32x128xf32>
    %36 = tpu.matmul %34, %35, %cst_26 {dimension_numbers = #tpu.dot_dimension_numbers<[1], [0], [0], [1], [0, 0, 1, 1], [], []>} : vector<32x128xbf16>, vector<128x128xbf16>, vector<32x128xf32> -> vector<32x128xf32>
    %37 = vector.broadcast %1 : vector<1x128xf32> to vector<32x128xf32>
    %38 = arith.addf %36, %37 : vector<32x128xf32>
    %39 = arith.negf %38 : vector<32x128xf32>
    %40 = math.exp %39 : vector<32x128xf32>
    %cst_27 = arith.constant 1.000000e+00 : f32
    %41 = vector.broadcast %cst_27 : f32 to vector<32x128xf32>
    %42 = arith.addf %41, %40 : vector<32x128xf32>
    %43 = arith.divf %41, %42 : vector<32x128xf32>
    %c0_28 = arith.constant 0 : index
    %c0_29 = arith.constant 0 : index
    %44 = vector.load %arg9[%c0_28, %c0_29] : memref<32x128xf32, #tpu.memory_space<vmem>>, vector<32x128xf32>
    tpu.vector_store %arg9[%c0_28, %c0_29], %43 {strides = array<i32>} : memref<32x128xf32, #tpu.memory_space<vmem>>, vector<32x128xf32>,
    %c0_30 = arith.constant 0 : index
    %c0_31 = arith.constant 0 : index
    %45 = vector.load %arg10[%c0_30, %c0_31] : memref<32x256xf32, #tpu.memory_space<vmem>>, vector<32x256xf32>
    tpu.vector_store %arg10[%c0_30, %c0_31], %17 {strides = array<i32>} : memref<32x256xf32, #tpu.memory_space<vmem>>, vector<32x256xf32>,
    return
  }
  func.func @transform_0(%arg0: i32) -> (i32, i32) {
    %c0_i32 = arith.constant 0 : i32
    %c0_i32_0 = arith.constant 0 : i32
    return %arg0, %c0_i32 : i32, i32
  }
  func.func @transform_1(%arg0: i32) -> (i32, i32) {
    %c0_i32 = arith.constant 0 : i32
    %c0_i32_0 = arith.constant 0 : i32
    return %arg0, %c0_i32 : i32, i32
  }
  func.func @transform_2(%arg0: i32) -> (i32, i32) {
    %c0_i32 = arith.constant 0 : i32
    %c0_i32_0 = arith.constant 0 : i32
    return %arg0, %c0_i32 : i32, i32
  }
  func.func @transform_3(%arg0: i32) -> (i32, i32) {
    %c0_i32 = arith.constant 0 : i32
    %c0_i32_0 = arith.constant 0 : i32
    %c0_i32_1 = arith.constant 0 : i32
    return %c0_i32, %c0_i32_0 : i32, i32
  }
  func.func @transform_4(%arg0: i32) -> (i32, i32) {
    %c0_i32 = arith.constant 0 : i32
    %c0_i32_0 = arith.constant 0 : i32
    %c0_i32_1 = arith.constant 0 : i32
    return %c0_i32, %c0_i32_0 : i32, i32
  }
  func.func @transform_5(%arg0: i32) -> (i32, i32) {
    %c0_i32 = arith.constant 0 : i32
    %c0_i32_0 = arith.constant 0 : i32
    %c0_i32_1 = arith.constant 0 : i32
    return %c0_i32, %c0_i32_0 : i32, i32
  }
  func.func @transform_6(%arg0: i32) -> (i32, i32) {
    %c0_i32 = arith.constant 0 : i32
    %c0_i32_0 = arith.constant 0 : i32
    %c0_i32_1 = arith.constant 0 : i32
    return %c0_i32, %c0_i32_0 : i32, i32
  }
  func.func @transform_7(%arg0: i32) -> (i32, i32) {
    %c0_i32 = arith.constant 0 : i32
    %c0_i32_0 = arith.constant 0 : i32
    %c0_i32_1 = arith.constant 0 : i32
    return %c0_i32, %c0_i32_0 : i32, i32
  }
  func.func @transform_8(%arg0: i32) -> (i32, i32) {
    %c0_i32 = arith.constant 0 : i32
    %c0_i32_0 = arith.constant 0 : i32
    return %arg0, %c0_i32 : i32, i32
  }
  func.func @transform_9(%arg0: i32) -> (i32, i32) {
    %c0_i32 = arith.constant 0 : i32
    %c0_i32_0 = arith.constant 0 : i32
    return %arg0, %c0_i32 : i32, i32
  }
}

</mosaic_0001>

<bundles_post_ra>
// kernel: cvae_forward.1
= control target key start
LH: loop header
LB: loop body
LE: loop exit
PB: predicated region body
PF: predicated region fallthrough
CT: control target
= control target key end

     0   :  { %s1718_s30 = smov 0   ;;  %s1942_s0 = inlined_call_operand.vmem [shape: f32[64,128], index: 0, kind: input, shape index: {}]   ;;  %s1943_s1 = inlined_call_operand.vmem [shape: f32[64,128], index: 1, kind: input, shape index: {}]   ;;  %s1944_s2 = inlined_call_operand.vmem [shape: f32[64,128], index: 2, kind: input, shape index: {}]   ;;  %s1945_s3 = inlined_call_operand.vmem [shape: bf16[256,128], index: 3, kind: input, shape index: {}]   ;;  %s1946_s4 = inlined_call_operand.vmem [shape: bf16[128,256], index: 4, kind: input, shape index: {}]   ;;  %s1947_s5 = inlined_call_operand.vmem [shape: bf16[256,128], index: 5, kind: input, shape index: {}]   ;;  %s1948_s6 = inlined_call_operand.vmem [shape: bf16[128,128], index: 6, kind: input, shape index: {}]   ;;  %s1949_s7 = inlined_call_operand.vmem [shape: f32[1,384], index: 7, kind: input, shape index: {}]   ;;  %s1950_s8 = inlined_call_operand.vmem [shape: f32[64,128], index: 8, kind: output, shape index: {0}]   ;;  %s1951_s9 = inlined_call_operand.vmem [shape: f32[64,256], index: 9, kind: output, shape index: {1}]  }
   0x1 LB: > { %s1332_s10 = sadd.s32 4294967295, %s1665_s30   ;;  %p1336_p0 = scmp.ge.s32.totalorder %s1665_s30, 1  ;;  %s1665_s30 = sphi %s1718_s30, %s20_s30  }
   0x2   : > { %p313_p1 = scmp.lt.s32.totalorder %s1665_s30, 3 }
   0x4   : > { %p314_p2 = pnand %p1336_p0, %p313_p1 }
   0x5   : > { %s1337_s13 = sshll.u32 (!%p314_p2), %s1332_s10, 2 }
   0x6   : > { %317 = sbr.rel (%p314_p2) target bundleno = 925 (0x39d), region = 52  ;;  %p366_p3 = scmp.lt.s32.totalorder (!%p314_p2), %s1337_s13, 7 }
   0xb   : > { %v1571_v0 = vld [vmem:[%s1945_s3 + $0x78] sm:$0xff]   ;;  %v1573_v2 = vld [vmem:[%s1945_s3 + $0x70] sm:$0xff]   ;;  %v1575_v4 = vld [vmem:[%s1945_s3 + $0x68] sm:$0xff]   ;;  %s1953_s13 = smov (!%p366_p3, %s1337_s13), 7  ;;  %v1667_v44 = vmov 0  }
   0xc   : > { %v1572_v1 = vld [vmem:[%s1945_s3 + $0x38] sm:$0xff]   ;;  %1462 = vmatprep.subr.bf16.mxu0 %v1571_v0  ;;  %v1574_v3 = vld [vmem:[%s1945_s3 + $0x30] sm:$0xff]   ;;  %v1576_v5 = vld [vmem:[%s1945_s3 + $0x28] sm:$0xff]   ;;  %s1753_s28 = sshll.u32 %s1953_s13, 3  ;;  %s1411_s20 = sshll.u32 %s1953_s13, 4 }
   0xd   : > { %1482 = vmatprep.subr.bf16.mxu1 %v1572_v1  ;;  %1463 = vmatpush3.bf16.msra.mxu0 %v1571_v0  ;;  %v1577_v6 = vld [vmem:[%s1945_s3 + $0x60] sm:$0xff]   ;;  %v1579_v8 = vld [vmem:[%s1945_s3 + $0x58] sm:$0xff]   ;;  %s375_s16 = scalar_lea.vmem %s1943_s1, %s1753_s28  ;;  %s369_s19 = scalar_lea.vmem %s1942_s0, %s1753_s28  ;;  %v1581_v10 = vld [vmem:[%s1945_s3 + $0x50] sm:$0xff]  }
   0xe   : > { %1483 = vmatpush3.bf16.msra.mxu1 %v1572_v1  ;;  %1464 = vmatprep.subr.bf16.mxu0 %v1573_v2  ;;  %v1578_v7 = vld [vmem:[%s1945_s3 + $0x20] sm:$0xff]   ;;  %v1580_v9 = vld [vmem:[%s1945_s3 + $0x18] sm:$0xff]   ;;  %v406_v12 = vld [vmem:[%s375_s16 + $0x8] sm:$0xff]  ;;  %s381_s23 = scalar_lea.vmem %s1944_s2, %s1753_s28  ;;  %s387_s17 = scalar_lea.vmem %s1950_s8, %s1753_s28 }
   0xf   : > { %1484 = vmatprep.subr.bf16.mxu1 %v1574_v3  ;;  %v405_v11 = vld [vmem:[%s375_s16] sm:$0xff]  ;;  %v1582_v14 = vld [vmem:[%s1945_s3 + $0x10] sm:$0xff]   ;;  %v400_v16 = vld [vmem:[%s369_s19 + $0x8] sm:$0xff] }
  0x10   : > { %v399_v13 = vld [vmem:[%s369_s19] sm:$0xff]  ;;  %v409_v15 = vpack.c.bf16 %v406_v12, %v405_v11  ;;  %v1583_v18 = vld [vmem:[%s1945_s3 + $0x48] sm:$0xff]   ;;  %v407_v22 = vld [vmem:[%s375_s16 + $0x10] sm:$0xff] }
  0x11   : > { %1465 = vmatpush3.bf16.msra.mxu0 %v1573_v2  ;;  %v403_v17 = vpack.c.bf16 %v400_v16, %v399_v13  ;;  %v1584_v19 = vld [vmem:[%s1945_s3 + $0x8] sm:$0xff]   ;;  %v1585_v20 = vld [vmem:[%s1945_s3 + $0x40] sm:$0xff]   ;;  %v408_v23 = vld [vmem:[%s375_s16 + $0x18] sm:$0xff] }
  0x12   : > { %1485 = vmatpush3.bf16.msra.mxu1 %v1574_v3  ;;  %1466 = vmatprep.subr.bf16.mxu0 %v1575_v4  ;;  %v1586_v21 = vld [vmem:[%s1945_s3] sm:$0xff]   ;;  %v401_v24 = vld [vmem:[%s369_s19 + $0x10] sm:$0xff]  ;;  %v402_v25 = vld [vmem:[%s369_s19 + $0x18] sm:$0xff]  ;;  %v1793_v28 = vpack.c.bf16 %v408_v23, %v407_v22  ;;  %s1909_s19 = scalar_lea.vmem %s1951_s9, %s1411_s20 }
  0x13   : > { %1486 = vmatprep.subr.bf16.mxu1 %v1576_v5  ;;  %1478 = vmatprep.mubr.bf16.mxu0 %v409_v15  ;;  %v1589_v26 = vld [vmem:[%s1946_s4 + $0x74] ss:$8 sps:$4 sm:$0xff]   ;;  %v1587_v27 = vld [vmem:[%s1946_s4 + $0x70] ss:$8 sps:$4 sm:$0xff]   ;;  %v1592_v29 = vld [vmem:[%s1946_s4 + $0x64] ss:$8 sps:$4 sm:$0xff]   ;;  %v404_v30 = vpack.c.bf16 %v402_v25, %v401_v24 }
  0x14   : > { %1498 = vmatprep.mubr.bf16.mxu1 %v403_v17  ;;  %v1590_v31 = vld [vmem:[%s1946_s4 + $0x60] ss:$8 sps:$4 sm:$0xff]   ;;  %v1595_v32 = vld [vmem:[%s1946_s4 + $0x54] ss:$8 sps:$4 sm:$0xff]   ;;  %v1593_v33 = vld [vmem:[%s1946_s4 + $0x50] ss:$8 sps:$4 sm:$0xff]  }
  0x15   : > { %1467 = vmatpush3.bf16.msra.mxu0 %v1575_v4  ;;  %v1598_v34 = vld [vmem:[%s1946_s4 + $0x44] ss:$8 sps:$4 sm:$0xff]   ;;  %v1596_v35 = vld [vmem:[%s1946_s4 + $0x40] ss:$8 sps:$4 sm:$0xff]   ;;  %v1601_v36 = vld [vmem:[%s1946_s4 + $0x34] ss:$8 sps:$4 sm:$0xff]  }
  0x16   : > { %1487 = vmatpush3.bf16.msra.mxu1 %v1576_v5  ;;  %1468 = vmatprep.subr.bf16.mxu0 %v1577_v6  ;;  %v1599_v37 = vld [vmem:[%s1946_s4 + $0x30] ss:$8 sps:$4 sm:$0xff]   ;;  %v1604_v38 = vld [vmem:[%s1946_s4 + $0x24] ss:$8 sps:$4 sm:$0xff]   ;;  %v1602_v39 = vld [vmem:[%s1946_s4 + $0x20] ss:$8 sps:$4 sm:$0xff]  }
  0x17   : > { %1488 = vmatprep.subr.bf16.mxu1 %v1578_v7  ;;  %v1607_v40 = vld [vmem:[%s1946_s4 + $0x14] ss:$8 sps:$4 sm:$0xff]   ;;  %v1605_v41 = vld [vmem:[%s1946_s4 + $0x10] ss:$8 sps:$4 sm:$0xff]   ;;  %v1610_v42 = vld [vmem:[%s1946_s4 + $0x4] ss:$8 sps:$4 sm:$0xff]  }
  0x18   : > { %v1608_v43 = vld [vmem:[%s1946_s4] ss:$8 sps:$4 sm:$0xff]   ;;  %v1611_v63 = vld [vmem:[%s1947_s5 + $0x78] sm:$0xff]   ;;  %v1612_v0 = vld [vmem:[%s1947_s5 + $0x70] sm:$0xff]  }
  0x19   : > { %1469 = vmatpush3.bf16.msra.mxu0 %v1577_v6  ;;  %v1613_v1 = vld [vmem:[%s1947_s5 + $0x38] sm:$0xff]   ;;  %v1614_v2 = vld [vmem:[%s1947_s5 + $0x68] sm:$0xff]   ;;  %v1615_v3 = vld [vmem:[%s1947_s5 + $0x30] sm:$0xff]  }
  0x1a   : > { %1489 = vmatpush3.bf16.msra.mxu1 %v1578_v7  ;;  %1470 = vmatprep.subr.bf16.mxu0 %v1579_v8  ;;  %v1616_v4 = vld [vmem:[%s1947_s5 + $0x60] sm:$0xff]   ;;  %v1617_v5 = vld [vmem:[%s1947_s5 + $0x28] sm:$0xff]   ;;  %v1618_v6 = vld [vmem:[%s1947_s5 + $0x58] sm:$0xff]  }
  0x1b   : > { %1490 = vmatprep.subr.bf16.mxu1 %v1580_v9  ;;  %v1619_v7 = vld [vmem:[%s1947_s5 + $0x20] sm:$0xff]   ;;  %v1623_v11 = vld [vmem:[%s1947_s5 + $0x10] sm:$0xff]   ;;  %v1625_v13 = vld [vmem:[%s1947_s5 + $0x8] sm:$0xff]  }
  0x1c   : > { %v1624_v12 = vld [vmem:[%s1947_s5 + $0x40] sm:$0xff]   ;;  %v1628_v16 = vld [vmem:[%s1948_s6 + $0x30] sm:$0xff]   ;;  %v1629_v17 = vld [vmem:[%s1948_s6 + $0x28] sm:$0xff]  }
  0x1d   : > { %1471 = vmatpush3.bf16.msra.mxu0 %v1579_v8  ;;  %v1620_v8 = vld [vmem:[%s1947_s5 + $0x50] sm:$0xff]   ;;  %v397_v23 = vld [vmem:[%s1949_s7] sm:$0x3] }
  0x1e   : > { %1491 = vmatpush3.bf16.msra.mxu1 %v1580_v9  ;;  %1472 = vmatprep.subr.bf16.mxu0 %v1581_v10  ;;  %v1621_v9 = vld [vmem:[%s1947_s5 + $0x18] sm:$0xff]  }
  0x1f   : > { %1492 = vmatprep.subr.bf16.mxu1 %v1582_v14 }
  0x21   : > { %1473 = vmatpush3.bf16.msra.mxu0 %v1581_v10  ;;  %v1622_v10 = vld [vmem:[%s1947_s5 + $0x48] sm:$0xff]  }
  0x22   : > { %1493 = vmatpush3.bf16.msra.mxu1 %v1582_v14  ;;  %1474 = vmatprep.subr.bf16.mxu0 %v1583_v18  ;;  %v1626_v14 = vld [vmem:[%s1947_s5] sm:$0xff]  }
  0x23   : > { %1494 = vmatprep.subr.bf16.mxu1 %v1584_v19 }
  0x25   : > { %1475 = vmatpush3.bf16.msra.mxu0 %v1583_v18  ;;  %v1630_v18 = vld [vmem:[%s1948_s6 + $0x20] sm:$0xff]  }
  0x26   : > { %1495 = vmatpush3.bf16.msra.mxu1 %v1584_v19  ;;  %1476 = vmatprep.subr.bf16.mxu0 %v1585_v20  ;;  %v1631_v19 = vld [vmem:[%s1948_s6 + $0x18] sm:$0xff]  }
  0x27   : > { %1496 = vmatprep.subr.bf16.mxu1 %v1586_v21 }
  0x29   : > { %1477 = vmatpush3.bf16.msra.mxu0 %v1585_v20  ;;  %v660_v20 = vlaneseq }
  0x2a   : > { %1497 = vmatpush3.bf16.msra.mxu1 %v1586_v21  ;;  %750 = vmatprep.subr.bf16.mxu0 %v1589_v26 }
  0x2b   : > { %1502 = vmatprep.subr.bf16.mxu1 %v1611_v63  ;;  %v661_v21 = vshrl.u32 %v660_v20, 7 }
  0x2c   : > { %1479 = vmatmul.mubr.bf16.vlgmr.msra.gmra.mxu0 %v1793_v28 }
  0x2d   : > { %1499 = vmatmul.mubr.bf16.vlgmr.msra.gmra.mxu1 %v404_v30  ;;  %751 = vmatpush1.bf16.msra.mxu0 %v1587_v27  ;;  %v662_v22 = vsub.s32 0, %v661_v21  ;;  %v666_v24 = vsub.s32 1, %v661_v21 }
  0x2e   : > { %752 = vmatprep.subr.bf16.mxu0 %v1592_v29  ;;  %1518 = vmatprep.mubr.bf16.mxu1 %v409_v15  ;;  %v1627_v15 = vld [vmem:[%s1948_s6 + $0x38] sm:$0xff]  }
  0x2f   : > { %782 = vmatprep.mubr.bf16.mxu0 %v1667_v44  ;;  %1503 = vmatpush3.bf16.msra.mxu1 %v1611_v63  ;;  %v663_v25 = vrot.slane %v397_v23, %v662_v22  ;;  %v667_v26 = vrot.slane %v397_v23, %v666_v24 }
  0x30   : > { %1504 = vmatprep.subr.bf16.mxu1 %v1612_v0 }
  0x31   : > { %753 = vmatpush1.bf16.msra.mxu0 %v1590_v31 }
  0x32   : > { %754 = vmatprep.subr.bf16.mxu0 %v1595_v32 }
  0x33   : > { %1505 = vmatpush3.bf16.msra.mxu1 %v1612_v0 }
  0x34   : > { %1506 = vmatprep.subr.bf16.mxu1 %v1614_v2 }
  0x35   : > { %755 = vmatpush1.bf16.msra.mxu0 %v1593_v33 }
  0x36   : > { %756 = vmatprep.subr.bf16.mxu0 %v1598_v34 }
  0x37   : > { %1507 = vmatpush3.bf16.msra.mxu1 %v1614_v2 }
  0x38   : > { %1508 = vmatprep.subr.bf16.mxu1 %v1616_v4 }
  0x39   : > { %757 = vmatpush1.bf16.msra.mxu0 %v1596_v35 }
  0x3a   : > { %758 = vmatprep.subr.bf16.mxu0 %v1601_v36 }
  0x3b   : > { %1509 = vmatpush3.bf16.msra.mxu1 %v1616_v4 }
  0x3c   : > { %1510 = vmatprep.subr.bf16.mxu1 %v1618_v6 }
  0x3d   : > { %759 = vmatpush1.bf16.msra.mxu0 %v1599_v37 }
  0x3e   : > { %760 = vmatprep.subr.bf16.mxu0 %v1604_v38 }
  0x3f   : > { %1511 = vmatpush3.bf16.msra.mxu1 %v1618_v6  ;;  %v1633_v6 = vld [vmem:[%s1948_s6 + $0x8] sm:$0xff]  }
  0x40   : > { %1512 = vmatprep.subr.bf16.mxu1 %v1620_v8 }
  0x41   : > { %761 = vmatpush1.bf16.msra.mxu0 %v1602_v39 }
  0x42   : > { %762 = vmatprep.subr.bf16.mxu0 %v1607_v40 }
  0x43   : > { %1513 = vmatpush3.bf16.msra.mxu1 %v1620_v8 }
  0x44   : > { %1514 = vmatprep.subr.bf16.mxu1 %v1622_v10 }
  0x45   : > { %763 = vmatpush1.bf16.msra.mxu0 %v1605_v41 }
  0x46   : > { %764 = vmatprep.subr.bf16.mxu0 %v1610_v42 }
  0x47   : > { %1515 = vmatpush3.bf16.msra.mxu1 %v1622_v10 }
  0x48   : > { %1516 = vmatprep.subr.bf16.mxu1 %v1624_v12 }
  0x49   : > { %765 = vmatpush1.bf16.msra.mxu0 %v1608_v43 }
  0x4a   : > { %1522 = vmatprep.subr.bf16.mxu0 %v1613_v1 }
  0x4b   : > { %1517 = vmatpush3.bf16.msra.mxu1 %v1624_v12 }
  0x4c   : > { %1542 = vmatprep.subr.bf16.mxu1 %v1627_v15 }
  0x4e   : > { %1519 = vmatmul.mubr.bf16.vlgmr.msra.gmra.mxu1 %v1793_v28 }
  0x4f   : > { %1543 = vmatpush3.bf16.msra.mxu1 %v1627_v15 }
  0x50   : > { %1544 = vmatprep.subr.bf16.mxu1 %v1628_v16 }
  0x53   : > { %1545 = vmatpush3.bf16.msra.mxu1 %v1628_v16 }
  0x54   : > { %1546 = vmatprep.subr.bf16.mxu1 %v1629_v17 }
  0x57   : > { %1547 = vmatpush3.bf16.msra.mxu1 %v1629_v17 }
  0x58   : > { %1548 = vmatprep.subr.bf16.mxu1 %v1630_v18 }
  0x5b   : > { %1549 = vmatpush3.bf16.msra.mxu1 %v1630_v18 }
  0x5c   : > { %1550 = vmatprep.subr.bf16.mxu1 %v1631_v19 }
  0x5f   : > { %1551 = vmatpush3.bf16.msra.mxu1 %v1631_v19 }
  0xec   : > { %v1480_v45 = vpop.f32.mrf.mxu0 }
  0xed   : > { %v1500_v46 = vpop.f32.mrf.mxu1 }
  0xee   : > { %v525_v47 = vpop.f32.mrf.mxu0  ;;  %v631_v59 = vadd.f32 %v1500_v46, %v1480_v45 }
  0xef   : > { %v622_v48 = vpop.f32.mrf.mxu1 }
  0xf0   : > { %v1481_v49 = vpop.f32.mrf.mxu0  ;;  %v623_v51 = vadd.f32 %v622_v48, %v525_v47  ;;  %v639_v61 = vmax.f32 %v631_v59, 0.0 }
  0xf1   : > { %v1501_v50 = vpop.f32.mrf.mxu1 }
  0xf2   : > { %v528_v52 = vpop.f32.mrf.mxu0  ;;  %v637_v55 = vmax.f32 %v623_v51, 0.0  ;;  %v634_v57 = vadd.f32 %v1501_v50, %v1481_v49 }
  0xf3   : > { %v625_v53 = vpop.f32.mrf.mxu1 }
  0xf4   : > { %v626_v54 = vadd.f32 %v625_v53, %v528_v52  ;;  %v640_v60 = vmax.f32 %v634_v57, 0.0  ;;  %v803_v52 = vld [vmem:[%s381_s23] sm:$0xff]  ;;  %v804_v53 = vld [vmem:[%s381_s23 + $0x8] sm:$0xff] }
  0xf6   : > { %v638_v56 = vmax.f32 %v626_v54, 0.0  ;;  %v642_v62 = vpack.c.bf16 %v640_v60, %v639_v61  ;;  %v805_v60 = vld [vmem:[%s381_s23 + $0x10] sm:$0xff] }
  0xf8   : > { %v641_v58 = vpack.c.bf16 %v638_v56, %v637_v55 }
  0xfa   : > { %783 = vmatmul.mubr.bf16.vlgmr.msra.gmra.mxu0 %v641_v58 }
  0xfb   : > { %792 = vmatprep.mubr.bf16.mxu0 %v1667_v44  ;;  %1523 = vmatpush3.bf16.msra.mxu0 %v1613_v1 }
  0xfc   : > { %1524 = vmatprep.subr.bf16.mxu0 %v1615_v3 }
  0xff   : > { %1525 = vmatpush3.bf16.msra.mxu0 %v1615_v3 }
 0x100   : > { %1526 = vmatprep.subr.bf16.mxu0 %v1617_v5 }
 0x102   : > { %793 = vmatmul.mubr.bf16.gmra.mxu0 %v642_v62  ;;  %v806_v62 = vld [vmem:[%s381_s23 + $0x18] sm:$0xff] }
 0x103   : > { %1527 = vmatpush3.bf16.msra.mxu0 %v1617_v5  ;;  %v1632_v5 = vld [vmem:[%s1948_s6 + $0x10] sm:$0xff]  }
 0x104   : > { %1528 = vmatprep.subr.bf16.mxu0 %v1619_v7  ;;  %1552 = vmatprep.subr.bf16.mxu1 %v1632_v5 }
 0x105   : > { %1553 = vmatpush3.bf16.msra.mxu1 %v1632_v5 }
 0x106   : > { %1554 = vmatprep.subr.bf16.mxu1 %v1633_v6 }
 0x107   : > { %1529 = vmatpush3.bf16.msra.mxu0 %v1619_v7  ;;  %v1634_v7 = vld [vmem:[%s1948_s6] sm:$0xff]  }
 0x108   : > { %1530 = vmatprep.subr.bf16.mxu0 %v1621_v9 }
 0x109   : > { %1555 = vmatpush3.bf16.msra.mxu1 %v1633_v6 }
 0x10a   : > { %1556 = vmatprep.subr.bf16.mxu1 %v1634_v7 }
 0x10b   : > { %1531 = vmatpush3.bf16.msra.mxu0 %v1621_v9 }
 0x10c   : > { %1532 = vmatprep.subr.bf16.mxu0 %v1623_v11 }
 0x10d   : > { %1557 = vmatpush3.bf16.msra.mxu1 %v1634_v7 }
 0x10e   : > { %v1520_v8 = vpop.f32.mrf.mxu1 }
 0x10f   : > { %1533 = vmatpush3.bf16.msra.mxu0 %v1623_v11 }
 0x110   : > { %1534 = vmatprep.subr.bf16.mxu0 %v1625_v13  ;;  %v943_v9 = vpop.f32.mrf.mxu1 }
 0x112   : > { %v1521_v11 = vpop.f32.mrf.mxu1 }
 0x113   : > { %1535 = vmatpush3.bf16.msra.mxu0 %v1625_v13 }
 0x114   : > { %1536 = vmatprep.subr.bf16.mxu0 %v1626_v14  ;;  %v946_v16 = vpop.f32.mrf.mxu1 }
 0x117   : > { %1537 = vmatpush3.bf16.msra.mxu0 %v1626_v14 }
 0x1ba   : > { %v784_v27 = vpop.f32.mrf.mxu0 }
 0x1bb   : > { %v785_v28 = vadd.f32 %v784_v27, %v663_v25 }
 0x1bc   : > { %v786_v29 = vpop.f32.mrf.mxu0 }
 0x1bd   : > { %1208 = vst [vmem:[%s1909_s19] sm:$0xff] %v785_v28  ;;  %v787_v30 = vadd.f32 %v786_v29, %v667_v26 }
 0x1be   : > { %v788_v31 = vpop.f32.mrf.mxu0 }
 0x1bf   : > { %v807_v32 = vmul.f32 0.5, %v787_v30  ;;  %1209 = vst [vmem:[%s1909_s19 + $0x8] sm:$0xff] %v787_v30  ;;  %v789_v33 = vadd.f32 %v788_v31, %v663_v25 }
 0x1c0   : > { %v790_v34 = vpop.f32.mrf.mxu0 }
 0x1c1   : > { %v811_v35 = vmul.f32 1.442695, %v807_v32  ;;  %1210 = vst [vmem:[%s1909_s19 + $0x10] sm:$0xff] %v789_v33  ;;  %v791_v36 = vadd.f32 %v790_v34, %v667_v26 }
 0x1c2   : > { %v794_v37 = vpop.f32.mrf.mxu0 }
 0x1c3   : > { %1635 = vpow2.f32 %v811_v35  ;;  %v808_v38 = vmul.f32 0.5, %v791_v36  ;;  %1211 = vst [vmem:[%s1909_s19 + $0x18] sm:$0xff] %v791_v36  ;;  %v795_v39 = vadd.f32 %v794_v37, %v663_v25 }
 0x1c4   : > { %v796_v40 = vpop.f32.mrf.mxu0 }
 0x1c5   : > { %v813_v41 = vmul.f32 1.442695, %v808_v38  ;;  %1212 = vst [vmem:[%s1909_s19 + $0x20] sm:$0xff] %v795_v39  ;;  %v797_v42 = vadd.f32 %v796_v40, %v667_v26 }
 0x1c6   : > { %v798_v43 = vpop.f32.mrf.mxu0 }
 0x1c7   : > { %1637 = vpow2.f32 %v813_v41  ;;  %v809_v44 = vmul.f32 0.5, %v797_v42  ;;  %1213 = vst [vmem:[%s1909_s19 + $0x28] sm:$0xff] %v797_v42  ;;  %v799_v45 = vadd.f32 %v798_v43, %v663_v25 }
 0x1c8   : > { %v800_v46 = vpop.f32.mrf.mxu0 }
 0x1c9   : > { %v815_v47 = vmul.f32 1.442695, %v809_v44  ;;  %1214 = vst [vmem:[%s1909_s19 + $0x30] sm:$0xff] %v799_v45  ;;  %v801_v48 = vadd.f32 %v800_v46, %v667_v26  ;;  %v1396_v26 = vld [vmem:[%s1949_s7 + $0x2] ss:$0 sm:$0xff] }
 0x1cb   : > { %1639 = vpow2.f32 %v815_v47  ;;  %v810_v49 = vmul.f32 0.5, %v801_v48  ;;  %1215 = vst [vmem:[%s1909_s19 + $0x38] sm:$0xff] %v801_v48 }
 0x1cd   : > { %v817_v50 = vmul.f32 1.442695, %v810_v49 }
 0x1cf   : > { %1641 = vpow2.f32 %v817_v50 }
 0x1d0   : > { %v1636_v51 = vpop.eup %1635 }
 0x1d1   : > { %v819_v54 = vmul.f32 %v1636_v51, %v803_v52 }
 0x1d3   : > { %v823_v57 = vadd.f32 %v819_v54, %v785_v28 }
 0x1d4   : > { %v1638_v55 = vpop.eup %1637 }
 0x1d5   : > { %v820_v56 = vmul.f32 %v1638_v55, %v804_v53 }
 0x1d7   : > { %v824_v58 = vadd.f32 %v820_v56, %v789_v33 }
 0x1d8   : > { %v1640_v59 = vpop.eup %1639 }
 0x1d9   : > { %v827_v61 = vpack.c.bf16 %v824_v58, %v823_v57  ;;  %v821_v63 = vmul.f32 %v1640_v59, %v805_v60 }
 0x1db   : > { %1538 = vmatprep.mubr.bf16.mxu0 %v827_v61  ;;  %v825_v2 = vadd.f32 %v821_v63, %v795_v39 }
 0x1dc   : > { %v1642_v0 = vpop.eup %1641 }
 0x1dd   : > { %v822_v1 = vmul.f32 %v1642_v0, %v806_v62 }
 0x1df   : > { %v826_v3 = vadd.f32 %v822_v1, %v799_v45 }
 0x1e1   : > { %v828_v4 = vpack.c.bf16 %v826_v3, %v825_v2 }
 0x1e3   : > { %1539 = vmatmul.mubr.bf16.vlgmr.msra.gmra.mxu0 %v828_v4 }
 0x2a3   : > { %v1540_v10 = vpop.f32.mrf.mxu0 }
 0x2a4   : > { %v1049_v17 = vadd.f32 %v1540_v10, %v1520_v8 }
 0x2a5   : > { %v1040_v12 = vpop.f32.mrf.mxu0 }
 0x2a6   : > { %v1041_v14 = vadd.f32 %v1040_v12, %v943_v9  ;;  %v1057_v23 = vmax.f32 %v1049_v17, 0.0 }
 0x2a7   : > { %v1541_v13 = vpop.f32.mrf.mxu0 }
 0x2a8   : > { %v1052_v15 = vadd.f32 %v1541_v13, %v1521_v11  ;;  %v1055_v21 = vmax.f32 %v1041_v14, 0.0 }
 0x2a9   : > { %v1043_v18 = vpop.f32.mrf.mxu0 }
 0x2aa   : > { %v1044_v19 = vadd.f32 %v1043_v18, %v946_v16  ;;  %v1058_v20 = vmax.f32 %v1052_v15, 0.0 }
 0x2ac   : > { %v1056_v22 = vmax.f32 %v1044_v19, 0.0  ;;  %v1060_v25 = vpack.c.bf16 %v1058_v20, %v1057_v23 }
 0x2ae   : > { %v1059_v24 = vpack.c.bf16 %v1056_v22, %v1055_v21 }
 0x2b0   : > { %1558 = vmatprep.mubr.bf16.mxu1 %v1059_v24 }
 0x2b1   : > { %1559 = vmatmul.mubr.bf16.vlgmr.msra.gmra.mxu1 %v1060_v25 }
 0x371   : > { %v1560_v27 = vpop.f32.mrf.mxu1 }
 0x372   : > { %v1174_v28 = vadd.f32 %v1560_v27, %v1396_v26 }
 0x373   : > { %v1165_v29 = vpop.f32.mrf.mxu1 }
 0x374   : > { %v1166_v30 = vadd.f32 %v1396_v26, %v1165_v29  ;;  %v1407_v31 = vmul.f32 -1.442695, %v1174_v28 }
 0x375   : > { %v1561_v32 = vpop.f32.mrf.mxu1 }
 0x376   : > { %v1405_v33 = vmul.f32 -1.442695, %v1166_v30  ;;  %v1177_v34 = vadd.f32 %v1561_v32, %v1396_v26 }
 0x377   : > { %v1168_v35 = vpop.f32.mrf.mxu1 }
 0x378   : > { %1643 = vpow2.f32 %v1405_v33  ;;  %v1408_v36 = vmul.f32 -1.442695, %v1177_v34  ;;  %v1169_v37 = vadd.f32 %v1396_v26, %v1168_v35 }
 0x379   : > { %1645 = vpow2.f32 %v1407_v31 }
 0x37a   : > { %1647 = vpow2.f32 %v1408_v36  ;;  %v1406_v38 = vmul.f32 -1.442695, %v1169_v37 }
 0x37c   : > { %1649 = vpow2.f32 %v1406_v38 }
 0x385   : > { %v1644_v39 = vpop.eup %1643 }
 0x386   : > { %v1646_v40 = vpop.eup %1645  ;;  %v1192_v41 = vadd.f32 1.0, %v1644_v39 }
 0x387   : > { %v1648_v42 = vpop.eup %1647  ;;  %v1194_v44 = vadd.f32 1.0, %v1646_v40 }
 0x388   : > { %1651 = vrcp.f32 %v1192_v41  ;;  %v1195_v45 = vadd.f32 1.0, %v1648_v42 }
 0x389   : > { %v1650_v43 = vpop.eup %1649 }
 0x38a   : > { %v1193_v46 = vadd.f32 1.0, %v1650_v43 }
 0x38c   : > { %1653 = vrcp.f32 %v1193_v46 }
 0x38d   : > { %1655 = vrcp.f32 %v1194_v44 }
 0x38e   : > { %1657 = vrcp.f32 %v1195_v45 }
 0x395   : > { %v1652_v47 = vpop.eup %1651 }
 0x396   : > { %1204 = vst [vmem:[%s387_s17] sm:$0xff] %v1652_v47 }
 0x399   : > { %v1654_v48 = vpop.eup %1653 }
 0x39a   : > { %v1656_v49 = vpop.eup %1655  ;;  %1205 = vst [vmem:[%s387_s17 + $0x8] sm:$0xff] %v1654_v48 }
 0x39b   : > { %v1658_v50 = vpop.eup %1657  ;;  %1206 = vst [vmem:[%s387_s17 + $0x10] sm:$0xff] %v1656_v49 }
 0x39c   : > { %1207 = vst [vmem:[%s387_s17 + $0x18] sm:$0xff] %v1658_v50 }
 0x39d PF: > { %s20_s30 = sadd.s32 1, %s1665_s30  }
 0x39e   : > { %p17_p4 = scmp.ge.s32.totalorder %s20_s30, 4  }
 0x3a0   :  { %19 = sbr.rel (!%p17_p4) target bundleno = 1 (0x1), region = 100 }

</bundles_post_ra>
